<compile_context>
chip_gen: v6e
topology: v6e:2x2x1
jax: 0.10.0
libtpu: 0.0.40
codegen_flags: <defaults>
</compile_context>

<pallas_src>
import jax
import jax.numpy as jnp
from jax.experimental import pallas as pl
from jax.experimental.pallas import tpu as pltpu


def _round_up(x, m):
    return ((x + m - 1) // m) * m


def mlp_kernel(xt_ref, w1_ref, b1_ref, w2_ref, b2_ref,
               w3_ref, b3_ref, w4_ref, b4_ref, o_ref):
    # Activations are (features, tb): every vreg is lane-dense in the batch.
    xb = xt_ref[...].astype(jnp.bfloat16)                                # (D, tb)
    h1 = jnp.maximum(
        jnp.dot(w1_ref[...], xb, preferred_element_type=jnp.float32)
        + b1_ref[...], 0.0)                                              # (128, tb)
    h2 = jnp.maximum(
        jnp.dot(w2_ref[...], h1.astype(jnp.bfloat16),
                preferred_element_type=jnp.float32) + b2_ref[...], 0.0)  # (64, tb)
    h3 = jnp.maximum(
        jnp.dot(w3_ref[...], h2.astype(jnp.bfloat16),
                preferred_element_type=jnp.float32) + b3_ref[...], 0.0)  # (32, tb)
    # fc4 (32 -> 1), no activation: VPU multiply + sublane (XLU) reduce; avoids
    # an MXU matmul with a single useful output row.
    out = jnp.sum(h3 * w4_ref[...], axis=0, keepdims=True) + b4_ref[0]   # (1, tb)
    o_ref[...] = out.astype(o_ref.dtype)


def mlp_forward(x, params, *, tile_b=1024):
    """x: (B, D) float32. params: dict (see init_params). Returns (B, 1) f32."""
    B, D = x.shape

    # Batch tile: lane-dim blocks must be a multiple of 128 unless they span the
    # whole array, so either tb == B (single step) or tb % 128 == 0.
    if B >= 256:
        # Cap so the grid has >= 2 steps: keeps both v7x TensorCores busy via
        # the ("parallel",) axis; one extra grid step is noise on v5e/v6e.
        tb = min(_round_up(tile_b, 128), _round_up(pl.cdiv(B, 2), 128))
    else:
        tb = B
    grid = (pl.cdiv(B, tb),)
    # NOTE: if tile_b is ever pushed to >= ~2048, sub-chunk the tile inside the
    # kernel with lax.fori_loop to bound live activation ranges (vreg spills).

    w1, b1 = params["w1"], params["b1"]
    w2, b2 = params["w2"], params["b2"]
    w3, b3 = params["w3"], params["b3"]
    w4c, b4 = params["w4c"], params["b4"]

    # Weights/biases: constant index_map -> VMEM-resident across grid steps.
    resident = lambda a: pl.BlockSpec(a.shape, lambda i: (0, 0))

    flops = 2 * B * (D * 128 + 128 * 64 + 64 * 32 + 32)
    weight_bytes = sum(int(v.size) * v.dtype.itemsize for v in params.values())
    bytes_accessed = B * (D + 1) * 4 + weight_bytes

    # Lane-dense ("batch-in-lanes") plumbing: kernel consumes x^T and emits a
    # (1, B) row; reshaping back to (B, 1) happens in the wrapper.
    xt = x.T                                                             # (D, B)

    out_row = pl.pallas_call(
        mlp_kernel,
        out_shape=jax.ShapeDtypeStruct((1, B), jnp.float32),
        grid=grid,
        in_specs=[
            pl.BlockSpec((D, tb), lambda i: (0, i)),            # x^T tile (pipelined)
            resident(w1), resident(b1),
            resident(w2), resident(b2),
            resident(w3), resident(b3),
            resident(w4c),                                      # (32, 1) column for VPU reduce
            pl.BlockSpec(memory_space=pltpu.MemorySpace.SMEM),  # b4 scalar
        ],
        out_specs=pl.BlockSpec((1, tb), lambda i: (0, i)),      # lane-dense stores
        compiler_params=pltpu.CompilerParams(
            dimension_semantics=("parallel",)),
        cost_estimate=pl.CostEstimate(
            flops=flops, transcendentals=0, bytes_accessed=bytes_accessed),
    )(xt, w1, b1, w2, b2, w3, b3, w4c, b4)

    return out_row.reshape(B, 1)


def init_params(key, input_dim):
    """Deterministic init mirroring nn.Linear (W: (out, in), b: (out,)).

    Weights are kept in PyTorch's (out, in) orientation - exactly what the
    batch-in-lanes kernel wants (act_out = W @ act_in).  w1..w3 are stored bf16
    (MXU operands), biases are f32 (out, 1) columns; the last layer's weight is
    kept as an f32 (32, 1) column for the in-kernel VPU reduce and b4 as an f32
    scalar for SMEM."""
    dims = [(input_dim, 128), (128, 64), (64, 32), (32, 1)]
    params = {}
    for i, (fan_in, fan_out) in enumerate(dims, start=1):
        key, kw, kb = jax.random.split(key, 3)
        bound = 1.0 / jnp.sqrt(jnp.float32(fan_in))
        w = jax.random.uniform(kw, (fan_out, fan_in), jnp.float32, -bound, bound)
        b = jax.random.uniform(kb, (fan_out,), jnp.float32, -bound, bound)
        if i < 4:
            params[f"w{i}"] = w.astype(jnp.bfloat16)
            params[f"b{i}"] = b.reshape(fan_out, 1)
        else:
            params["w4c"] = w.reshape(fan_in, 1)    # (1, 32) row -> (32, 1) column
            params["b4"] = b                         # shape (1,), SMEM scalar
    return params


def mlp_reference_matched(x, p):
    """Mirrors the kernel's math exactly (bf16 MXU operands, f32 accumulation)."""
    f32 = jnp.float32
    h = jnp.maximum(jnp.dot(p["w1"], x.T.astype(jnp.bfloat16),
                            preferred_element_type=f32) + p["b1"], 0.0)
    h = jnp.maximum(jnp.dot(p["w2"], h.astype(jnp.bfloat16),
                            preferred_element_type=f32) + p["b2"], 0.0)
    h = jnp.maximum(jnp.dot(p["w3"], h.astype(jnp.bfloat16),
                            preferred_element_type=f32) + p["b3"], 0.0)
    out = jnp.sum(h * p["w4c"], axis=0, keepdims=True) + p["b4"][0]      # (1, B)
    return out.T                                                          # (B, 1)


def mlp_reference_fp32(x, p):
    """Pure-f32 reference of the original PyTorch forward semantics."""
    h = jnp.maximum(x @ p["w1"].astype(jnp.float32).T + p["b1"].T, 0.0)
    h = jnp.maximum(h @ p["w2"].astype(jnp.float32).T + p["b2"].T, 0.0)
    h = jnp.maximum(h @ p["w3"].astype(jnp.float32).T + p["b3"].T, 0.0)
    return h @ p["w4c"].astype(jnp.float32) + p["b4"]                     # (B, 1)


if __name__ == "__main__":
    key = jax.random.PRNGKey(0)
    key, kx = jax.random.split(key)

    batch, input_dim = 16, 32
    x = jax.random.normal(kx, (batch, input_dim), jnp.float32)
    params = init_params(key, input_dim)

    # Small single-tile case (grid of 1; block spans the full batch dim).
    out = jax.block_until_ready(mlp_forward(x, params))
    assert out.shape == (batch, 1), out.shape
    assert jnp.allclose(out, mlp_reference_matched(x, params), atol=1e-3, rtol=1e-3), \
        "mismatch vs matched-precision ref"
    assert jnp.allclose(out, mlp_reference_fp32(x, params), atol=5e-2, rtol=5e-2), \
        "mismatch vs fp32 ref"

    # Multi-step grid case: exercises 128-lane batch tiling, VMEM-resident
    # weights, lane-dense output stores, and the >=2-grid-step cap (v7x megacore).
    key, kx2 = jax.random.split(key)
    batch2 = 384
    x2 = jax.random.normal(kx2, (batch2, input_dim), jnp.float32)
    out2 = jax.block_until_ready(mlp_forward(x2, params, tile_b=128))
    assert out2.shape == (batch2, 1), out2.shape
    assert jnp.allclose(out2, mlp_reference_matched(x2, params), atol=1e-3, rtol=1e-3), \
        "mismatch (tiled) vs ref"

    print("KERNEL_OK")
</pallas_src>

<mosaic_0001>
module attributes {stable_mosaic.version = 11 : i64} {
  func.func @mlp_kernel(%arg0: i32, %arg1: memref<32x16xf32, #tpu.memory_space<vmem>>, %arg2: memref<128x32xbf16, #tpu.memory_space<vmem>>, %arg3: memref<128x1xf32, #tpu.memory_space<vmem>>, %arg4: memref<64x128xbf16, #tpu.memory_space<vmem>>, %arg5: memref<64x1xf32, #tpu.memory_space<vmem>>, %arg6: memref<32x64xbf16, #tpu.memory_space<vmem>>, %arg7: memref<32x1xf32, #tpu.memory_space<vmem>>, %arg8: memref<32x1xf32, #tpu.memory_space<vmem>>, %arg9: memref<1xf32, #tpu.memory_space<smem>>, %arg10: memref<1x16xf32, #tpu.memory_space<vmem>>) attributes {dimension_semantics = [#tpu.dimension_semantics<parallel>], iteration_bounds = array<i64: 1>, scalar_prefetch = 0 : i64, scratch_operands = 0 : i64, tpu.core_type = #tpu.core_type<tc>, window_params = [{transform_indices = @transform_0, window_bounds = array<i64: 32, 16>}, {pipeline_mode = #tpu.pipeline_mode<synchronous>, transform_indices = @transform_1, window_bounds = array<i64: 128, 32>}, {pipeline_mode = #tpu.pipeline_mode<synchronous>, transform_indices = @transform_2, window_bounds = array<i64: 128, 1>}, {pipeline_mode = #tpu.pipeline_mode<synchronous>, transform_indices = @transform_3, window_bounds = array<i64: 64, 128>}, {pipeline_mode = #tpu.pipeline_mode<synchronous>, transform_indices = @transform_4, window_bounds = array<i64: 64, 1>}, {pipeline_mode = #tpu.pipeline_mode<synchronous>, transform_indices = @transform_5, window_bounds = array<i64: 32, 64>}, {pipeline_mode = #tpu.pipeline_mode<synchronous>, transform_indices = @transform_6, window_bounds = array<i64: 32, 1>}, {pipeline_mode = #tpu.pipeline_mode<synchronous>, transform_indices = @transform_7, window_bounds = array<i64: 32, 1>}, {transform_indices = @transform_8, window_bounds = array<i64: 1>}, {transform_indices = @transform_9, window_bounds = array<i64: 1, 16>}]} {
    %c0 = arith.constant 0 : index
    %c0_0 = arith.constant 0 : index
    %0 = vector.load %arg1[%c0, %c0_0] : memref<32x16xf32, #tpu.memory_space<vmem>>, vector<32x16xf32>
    %1 = arith.truncf %0 : vector<32x16xf32> to vector<32x16xbf16>
    %c0_1 = arith.constant 0 : index
    %c0_2 = arith.constant 0 : index
    %2 = vector.load %arg2[%c0_1, %c0_2] : memref<128x32xbf16, #tpu.memory_space<vmem>>, vector<128x32xbf16>
    %cst = arith.constant dense<0.000000e+00> : vector<128x16xf32>
    %3 = tpu.matmul %2, %1, %cst {dimension_numbers = #tpu.dot_dimension_numbers<[1], [0], [0], [1], [0, 0, 1, 1], [], []>} : vector<128x32xbf16>, vector<32x16xbf16>, vector<128x16xf32> -> vector<128x16xf32>
    %c0_3 = arith.constant 0 : index
    %c0_4 = arith.constant 0 : index
    %4 = vector.load %arg3[%c0_3, %c0_4] : memref<128x1xf32, #tpu.memory_space<vmem>>, vector<128x1xf32>
    %5 = vector.broadcast %4 : vector<128x1xf32> to vector<128x16xf32>
    %6 = arith.addf %3, %5 : vector<128x16xf32>
    %cst_5 = arith.constant 0.000000e+00 : f32
    %7 = vector.broadcast %cst_5 : f32 to vector<128x16xf32>
    %8 = arith.maximumf %6, %7 : vector<128x16xf32>
    %c0_6 = arith.constant 0 : index
    %c0_7 = arith.constant 0 : index
    %9 = vector.load %arg4[%c0_6, %c0_7] : memref<64x128xbf16, #tpu.memory_space<vmem>>, vector<64x128xbf16>
    %10 = arith.truncf %8 : vector<128x16xf32> to vector<128x16xbf16>
    %cst_8 = arith.constant dense<0.000000e+00> : vector<64x16xf32>
    %11 = tpu.matmul %9, %10, %cst_8 {dimension_numbers = #tpu.dot_dimension_numbers<[1], [0], [0], [1], [0, 0, 1, 1], [], []>} : vector<64x128xbf16>, vector<128x16xbf16>, vector<64x16xf32> -> vector<64x16xf32>
    %c0_9 = arith.constant 0 : index
    %c0_10 = arith.constant 0 : index
    %12 = vector.load %arg5[%c0_9, %c0_10] : memref<64x1xf32, #tpu.memory_space<vmem>>, vector<64x1xf32>
    %13 = vector.broadcast %12 : vector<64x1xf32> to vector<64x16xf32>
    %14 = arith.addf %11, %13 : vector<64x16xf32>
    %cst_11 = arith.constant 0.000000e+00 : f32
    %15 = vector.broadcast %cst_11 : f32 to vector<64x16xf32>
    %16 = arith.maximumf %14, %15 : vector<64x16xf32>
    %c0_12 = arith.constant 0 : index
    %c0_13 = arith.constant 0 : index
    %17 = vector.load %arg6[%c0_12, %c0_13] : memref<32x64xbf16, #tpu.memory_space<vmem>>, vector<32x64xbf16>
    %18 = arith.truncf %16 : vector<64x16xf32> to vector<64x16xbf16>
    %cst_14 = arith.constant dense<0.000000e+00> : vector<32x16xf32>
    %19 = tpu.matmul %17, %18, %cst_14 {dimension_numbers = #tpu.dot_dimension_numbers<[1], [0], [0], [1], [0, 0, 1, 1], [], []>} : vector<32x64xbf16>, vector<64x16xbf16>, vector<32x16xf32> -> vector<32x16xf32>
    %c0_15 = arith.constant 0 : index
    %c0_16 = arith.constant 0 : index
    %20 = vector.load %arg7[%c0_15, %c0_16] : memref<32x1xf32, #tpu.memory_space<vmem>>, vector<32x1xf32>
    %21 = vector.broadcast %20 : vector<32x1xf32> to vector<32x16xf32>
    %22 = arith.addf %19, %21 : vector<32x16xf32>
    %cst_17 = arith.constant 0.000000e+00 : f32
    %23 = vector.broadcast %cst_17 : f32 to vector<32x16xf32>
    %24 = arith.maximumf %22, %23 : vector<32x16xf32>
    %c0_18 = arith.constant 0 : index
    %c0_19 = arith.constant 0 : index
    %25 = vector.load %arg8[%c0_18, %c0_19] : memref<32x1xf32, #tpu.memory_space<vmem>>, vector<32x1xf32>
    %26 = vector.broadcast %25 : vector<32x1xf32> to vector<32x16xf32>
    %27 = arith.mulf %24, %26 : vector<32x16xf32>
    %cst_20 = arith.constant dense<0.000000e+00> : vector<16xf32>
    %28 = vector.multi_reduction <add>, %27, %cst_20 [0] : vector<32x16xf32> to vector<16xf32>
    %29 = vector.shape_cast %28 : vector<16xf32> to vector<1x16xf32>
    %c0_21 = arith.constant 0 : index
    %30 = memref.load %arg9[%c0_21] : memref<1xf32, #tpu.memory_space<smem>>
    %31 = vector.broadcast %30 : f32 to vector<1x16xf32>
    %32 = arith.addf %29, %31 : vector<1x16xf32>
    %c0_22 = arith.constant 0 : index
    %c0_23 = arith.constant 0 : index
    %33 = vector.load %arg10[%c0_22, %c0_23] : memref<1x16xf32, #tpu.memory_space<vmem>>, vector<1x16xf32>
    tpu.vector_store %arg10[%c0_22, %c0_23], %32 {strides = array<i32>} : memref<1x16xf32, #tpu.memory_space<vmem>>, vector<1x16xf32>,
    return
  }
  func.func @transform_0(%arg0: i32) -> (i32, i32) {
    %c0_i32 = arith.constant 0 : i32
    %c0_i32_0 = arith.constant 0 : i32
    return %c0_i32, %arg0 : i32, i32
  }
  func.func @transform_1(%arg0: i32) -> (i32, i32) {
    %c0_i32 = arith.constant 0 : i32
    %c0_i32_0 = arith.constant 0 : i32
    %c0_i32_1 = arith.constant 0 : i32
    return %c0_i32, %c0_i32_0 : i32, i32
  }
  func.func @transform_2(%arg0: i32) -> (i32, i32) {
    %c0_i32 = arith.constant 0 : i32
    %c0_i32_0 = arith.constant 0 : i32
    %c0_i32_1 = arith.constant 0 : i32
    return %c0_i32, %c0_i32_0 : i32, i32
  }
  func.func @transform_3(%arg0: i32) -> (i32, i32) {
    %c0_i32 = arith.constant 0 : i32
    %c0_i32_0 = arith.constant 0 : i32
    %c0_i32_1 = arith.constant 0 : i32
    return %c0_i32, %c0_i32_0 : i32, i32
  }
  func.func @transform_4(%arg0: i32) -> (i32, i32) {
    %c0_i32 = arith.constant 0 : i32
    %c0_i32_0 = arith.constant 0 : i32
    %c0_i32_1 = arith.constant 0 : i32
    return %c0_i32, %c0_i32_0 : i32, i32
  }
  func.func @transform_5(%arg0: i32) -> (i32, i32) {
    %c0_i32 = arith.constant 0 : i32
    %c0_i32_0 = arith.constant 0 : i32
    %c0_i32_1 = arith.constant 0 : i32
    return %c0_i32, %c0_i32_0 : i32, i32
  }
  func.func @transform_6(%arg0: i32) -> (i32, i32) {
    %c0_i32 = arith.constant 0 : i32
    %c0_i32_0 = arith.constant 0 : i32
    %c0_i32_1 = arith.constant 0 : i32
    return %c0_i32, %c0_i32_0 : i32, i32
  }
  func.func @transform_7(%arg0: i32) -> (i32, i32) {
    %c0_i32 = arith.constant 0 : i32
    %c0_i32_0 = arith.constant 0 : i32
    %c0_i32_1 = arith.constant 0 : i32
    return %c0_i32, %c0_i32_0 : i32, i32
  }
  func.func @transform_8(%arg0: i32) -> i32 {
    %c0_i32 = arith.constant 0 : i32
    %c0_i32_0 = arith.constant 0 : i32
    return %c0_i32 : i32
  }
  func.func @transform_9(%arg0: i32) -> (i32, i32) {
    %c0_i32 = arith.constant 0 : i32
    %c0_i32_0 = arith.constant 0 : i32
    return %c0_i32, %arg0 : i32, i32
  }
}

</mosaic_0001>

<bundles_post_ra>
// kernel: tpu_custom_call.1
= control target key start
LH: loop header
LB: loop body
LE: loop exit
PB: predicated region body
PF: predicated region fallthrough
CT: control target
= control target key end

     0   :  { %vm193_vm0 = vcmask 261120   ;;  %v803_v5 = vmov 0   ;;  %s1030_s0 = inlined_call_operand.vmem [shape: f32[32,16], index: 0, kind: input, shape index: {}]   ;;  %s1031_s1 = inlined_call_operand.vmem [shape: bf16[128,32], index: 1, kind: input, shape index: {}]   ;;  %s1032_s2 = inlined_call_operand.vmem [shape: f32[128,1], index: 2, kind: input, shape index: {}]   ;;  %s1033_s3 = inlined_call_operand.vmem [shape: bf16[64,128], index: 3, kind: input, shape index: {}]   ;;  %s1034_s4 = inlined_call_operand.vmem [shape: f32[64,1], index: 4, kind: input, shape index: {}]   ;;  %s1035_s5 = inlined_call_operand.vmem [shape: bf16[32,64], index: 5, kind: input, shape index: {}]   ;;  %s1036_s6 = inlined_call_operand.vmem [shape: f32[32,1], index: 6, kind: input, shape index: {}]   ;;  %s1037_s7 = inlined_call_operand.vmem [shape: f32[32,1], index: 7, kind: input, shape index: {}]   ;;  %s1038_s8 = inlined_call_operand.<no memory space> [shape: f32[1], index: 8, kind: input, shape index: {}]   ;;  %s1039_s9 = inlined_call_operand.hbm [shape: f32[1,16], index: 9, kind: output, shape index: {}]  }
   0x1   :  { %v37_v0 = vld [vmem:[%s1030_s0 + $0x10] sm:$0xff]  ;;  %v38_v1 = vld [vmem:[%s1030_s0 + $0x18] sm:$0xff]  ;;  %v35_v2 = vld [vmem:[%s1030_s0] sm:$0xff]  ;;  %765 = vset.pattern.permute.xlu0 %v803_v5  ;;  %766 = vset.pattern.permute.xlu1 %v803_v5 }
   0x2   :  { %v40_v3 = vpack.c.bf16 %v38_v1, %v37_v0  ;;  %v36_v4 = vld [vmem:[%s1030_s0 + $0x8] sm:$0xff]  ;;  %v767_v7 = vld [vmem:[%s1031_s1] sm:$0xff]   ;;  %v769_v9 = vld [vmem:[%s1031_s1 + $0x10] sm:$0xff]  }
   0x3   :  { %v39_v6 = vpack.c.bf16 %v36_v4, %v35_v2  ;;  %711 = vmatprep.mubr.msk.bf16.mxu0 %vm193_vm0, %v767_v7  ;;  %v768_v8 = vld [vmem:[%s1031_s1 + $0x8] sm:$0xff]   ;;  %v71_v10 = vld [vmem:[%s1032_s2 + $0x70] sm:$0xff]  ;;  %v69_v11 = vld [vmem:[%s1032_s2 + $0x60] sm:$0xff] }
   0x4   :  { %707 = vmatprep.subr.bf16.mxu0 %v40_v3  ;;  %145 = vperm.xlu0 %765, %v71_v10   ;;  %v72_v12 = vld [vmem:[%s1032_s2 + $0x78] sm:$0xff]  ;;  %v70_v13 = vld [vmem:[%s1032_s2 + $0x68] sm:$0xff]  ;;  %v67_v15 = vld [vmem:[%s1032_s2 + $0x50] sm:$0xff] }
   0x5   :  { %708 = vmatpush3.bf16.msra.mxu0 %v40_v3  ;;  %135 = vperm.xlu1 %766, %v69_v11   ;;  %v770_v14 = vld [vmem:[%s1031_s1 + $0x18] sm:$0xff]   ;;  %v771_v16 = vld [vmem:[%s1031_s1 + $0x20] sm:$0xff]   ;;  %v66_v19 = vld [vmem:[%s1032_s2 + $0x48] sm:$0xff] }
   0x6   :  { %709 = vmatprep.subr.bf16.mxu0 %v39_v6  ;;  %v68_v17 = vld [vmem:[%s1032_s2 + $0x58] sm:$0xff]  ;;  %v65_v18 = vld [vmem:[%s1032_s2 + $0x40] sm:$0xff]  ;;  %v772_v20 = vld [vmem:[%s1031_s1 + $0x28] sm:$0xff]  }
   0x7   :  { %v63_v21 = vld [vmem:[%s1032_s2 + $0x30] sm:$0xff]  ;;  %v64_v23 = vld [vmem:[%s1032_s2 + $0x38] sm:$0xff] }
   0x8   :  { %150 = vperm.xlu0 %765, %v72_v12   ;;  %v773_v22 = vld [vmem:[%s1031_s1 + $0x30] sm:$0xff]  }
   0x9   :  { %710 = vmatpush3.bf16.msra.mxu0 %v39_v6  ;;  %140 = vperm.xlu1 %766, %v70_v13  }
   0xc   :  { %712 = vmatmul.mubr.msk.bf16.vlgmr.msra.gmra.mxu0 %vm193_vm0, %v768_v8  ;;  %125 = vperm.xlu0 %765, %v67_v15  }
   0xd   :  { %715 = vmatprep.mubr.msk.bf16.mxu0 %vm193_vm0, %v769_v9  ;;  %130 = vperm.xlu1 %766, %v68_v17  }
  0x10   :  { %115 = vperm.xlu0 %765, %v65_v18  }
  0x11   :  { %120 = vperm.xlu1 %766, %v66_v19  }
  0x14   :  { %716 = vmatmul.mubr.msk.bf16.gmra.mxu0 %vm193_vm0, %v770_v14 }
  0x15   :  { %719 = vmatprep.mubr.msk.bf16.mxu0 %vm193_vm0, %v771_v16 }
  0x16   :  { %15 = vsyncpa [#allocation4], 0  ;;  %105 = vperm.xlu0 %765, %v63_v21   ;;  %110 = vperm.xlu1 %766, %v64_v23   ;;  %v61_v24 = vld [vmem:[%s1032_s2 + $0x20] sm:$0xff]  ;;  %v62_v25 = vld [vmem:[%s1032_s2 + $0x28] sm:$0xff]  ;;  %vm534_vm1 = vcmask 523264   ;;  %vm622_vm2 = vcmask 130048  }
  0x17   :  { %v774_v26 = vld [vmem:[%s1031_s1 + $0x38] sm:$0xff]   ;;  %v59_v27 = vld [vmem:[%s1032_s2 + $0x10] sm:$0xff]  ;;  %v57_v29 = vld [vmem:[%s1032_s2] sm:$0xff]  ;;  %s804_s14 = smov [#allocation3]   ;;  %vm639_vm3 = vcmask 122880  }
  0x18   :  { %v60_v28 = vld [vmem:[%s1032_s2 + $0x18] sm:$0xff]  ;;  %v58_v30 = vld [vmem:[%s1032_s2 + $0x8] sm:$0xff]  ;;  %v353_v31 = vld [vmem:[%s1034_s4 + $0x30] sm:$0xff]  ;;  %s647_s15 = sshll.u32 %s804_s14, 4  ;;  %s648_s15 = int_to_ptr.vmem [resolvable:$true] %s647_s15 }
  0x19   :  { %v354_v32 = vld [vmem:[%s1034_s4 + $0x38] sm:$0xff]  ;;  %v351_v33 = vld [vmem:[%s1034_s4 + $0x20] sm:$0xff]  ;;  %v352_v34 = vld [vmem:[%s1034_s4 + $0x28] sm:$0xff]  ;;  %s781_s16 = scalar_lea.vmem %s648_s15, 16  ;;  %s785_s17 = scalar_lea.vmem %s648_s15, 32 }
  0x1a   :  { %95 = vperm.xlu0 %765, %v61_v24   ;;  %100 = vperm.xlu1 %766, %v62_v25   ;;  %v349_v35 = vld [vmem:[%s1034_s4 + $0x10] sm:$0xff]  ;;  %v350_v36 = vld [vmem:[%s1034_s4 + $0x18] sm:$0xff]  ;;  %v347_v37 = vld [vmem:[%s1034_s4] sm:$0xff]  ;;  %p782_p0 = scmp.ne.s32.totalorder %s648_s15, %s781_s16  ;;  %p786_p1 = scmp.lt.s32.totalorder %s648_s15, %s648_s15 }
  0x1b   :  { %v348_v38 = vld [vmem:[%s1034_s4 + $0x8] sm:$0xff]  ;;  %v500_v39 = vld [vmem:[%s1036_s6] sm:$0xff]  ;;  %v502_v41 = vld [vmem:[%s1036_s6 + $0x10] sm:$0xff]  ;;  %p787_p2 = scmp.lt.s32.totalorder %s785_s17, %s781_s16 }
  0x1c   :  { %720 = vmatmul.mubr.msk.bf16.gmra.mxu0 %vm193_vm0, %v772_v20  ;;  %v501_v40 = vld [vmem:[%s1036_s6 + $0x8] sm:$0xff]  ;;  %v503_v42 = vld [vmem:[%s1036_s6 + $0x18] sm:$0xff]  ;;  %v594_v43 = vld [vmem:[%s1037_s7] sm:$0xff] }
  0x1d   :  { %723 = vmatprep.mubr.msk.bf16.mxu0 %vm193_vm0, %v773_v22  ;;  %v595_v44 = vld [vmem:[%s1037_s7 + $0x8] sm:$0xff]  ;;  %v596_v45 = vld [vmem:[%s1037_s7 + $0x10] sm:$0xff]  ;;  %v597_v46 = vld [vmem:[%s1037_s7 + $0x18] sm:$0xff]  ;;  %p788_p3 = por %p787_p2, %p786_p1 }
  0x1e   :  { %85 = vperm.xlu0 %765, %v59_v27   ;;  %90 = vperm.xlu1 %766, %v60_v28   ;;  %v775_v47 = vld [vmem:[%s1033_s3] sm:$0xff]  }
  0x1f   :  { %743 = vmatprep.mubr.bf16.mxu1 %v775_v47  ;;  %p789_p4 = pnand %p788_p3, %p782_p0 }
  0x22   :  { %75 = vperm.xlu0 %765, %v57_v29   ;;  %80 = vperm.xlu1 %766, %v58_v30  }
  0x24   :  { %724 = vmatmul.mubr.msk.bf16.gmra.mxu0 %vm193_vm0, %v774_v26 }
  0x26   :  { %387 = vperm.xlu0 %765, %v353_v31   ;;  %392 = vperm.xlu1 %766, %v354_v32  }
  0x2a   :  { %377 = vperm.xlu0 %765, %v351_v33   ;;  %382 = vperm.xlu1 %766, %v352_v34  }
  0x2e   :  { %367 = vperm.xlu0 %765, %v349_v35   ;;  %372 = vperm.xlu1 %766, %v350_v36  }
  0x32   :  { %357 = vperm.xlu0 %765, %v347_v37   ;;  %362 = vperm.xlu1 %766, %v348_v38  }
  0x36   :  { %506 = vperm.xlu0 %765, %v500_v39   ;;  %511 = vperm.xlu1 %766, %v501_v40  }
  0x3a   :  { %516 = vperm.xlu0 %765, %v502_v41   ;;  %521 = vperm.xlu1 %766, %v503_v42  }
  0x3e   :  { %600 = vperm.xlu0 %765, %v594_v43   ;;  %605 = vperm.xlu1 %766, %v595_v44  }
  0x42   :  { %610 = vperm.xlu0 %765, %v596_v45   ;;  %615 = vperm.xlu1 %766, %v597_v46  }
  0x7f   :  { %v146_v54 = vpop.permute.xlu0 %145 }
  0x80   :  { %v136_v52 = vpop.permute.xlu1 %135 }
  0x83   :  { %v151_v59 = vpop.permute.xlu0 %150 }
  0x84   :  { %v141_v57 = vpop.permute.xlu1 %140 }
  0x87   :  { %v126_v0 = vpop.permute.xlu0 %125 }
  0x88   :  { %v131_v62 = vpop.permute.xlu1 %130 }
  0x8b   :  { %v116_v6 = vpop.permute.xlu0 %115 }
  0x8c   :  { %v121_v3 = vpop.permute.xlu1 %120 }
  0x91   :  { %v111_v15 = vpop.permute.xlu1 %110  ;;  %v106_v20 = vpop.permute.xlu0 %105 }
  0x95   :  { %v101_v26 = vpop.permute.xlu1 %100  ;;  %v96_v30 = vpop.permute.xlu0 %95 }
  0x99   :  { %v91_v36 = vpop.permute.xlu1 %90  ;;  %v86_v39 = vpop.permute.xlu0 %85 }
  0x9d   :  { %v81_v45 = vpop.permute.xlu1 %80 }
  0xcc   :  { %v998_v48 = vpop.f32.mrf.mxu0 }
  0xcd   :  { %v261_v43 = vadd.f32 %v998_v48, %v86_v39  ;;  %v776_v48 = vld [vmem:[%s1033_s3 + $0x8] sm:$0xff]  }
  0xce   :  { %v1000_v49 = vpop.f32.mrf.mxu0 }
  0xd0   :  { %v714_v50 = vpop.f32.mrf.mxu0 }
  0xd1   :  { %v264_v40 = vadd.f32 %v714_v50, %v91_v36 }
  0xd2   :  { %v1002_v51 = vpop.f32.mrf.mxu0 }
  0xd3   :  { %v318_v46 = vmax.f32 %v264_v40, 0.0  ;;  %v256_v47 = vadd.f32 %v1002_v51, %v81_v45  ;;  %v777_v51 = vld [vmem:[%s1033_s3 + $0x10] sm:$0xff]  }
  0xd4   :  { %v717_v53 = vpop.f32.mrf.mxu0 }
  0xd5   :  { %v277_v31 = vadd.f32 %v717_v53, %v106_v20  ;;  %v76_v53 = vpop.permute.xlu0 %75  ;;  %v316_v50 = vmax.f32 %v256_v47, 0.0 }
  0xd6   :  { %v268_v55 = vpop.f32.mrf.mxu0 }
  0xd7   :  { %v321_v37 = vmax.f32 %v277_v31, 0.0  ;;  %v269_v38 = vadd.f32 %v268_v55, %v96_v30  ;;  %v253_v55 = vadd.f32 %v1000_v49, %v76_v53  ;;  %v778_v49 = vld [vmem:[%s1033_s3 + $0x18] sm:$0xff]  }
  0xd8   :  { %v718_v56 = vpop.f32.mrf.mxu0 }
  0xd9   :  { %v280_v27 = vadd.f32 %v718_v56, %v111_v15  ;;  %v319_v44 = vmax.f32 %v269_v38, 0.0 }
  0xda   :  { %v271_v58 = vpop.f32.mrf.mxu0 }
  0xdb   :  { %v322_v33 = vmax.f32 %v280_v27, 0.0  ;;  %v272_v34 = vadd.f32 %v271_v58, %v101_v26 }
  0xdc   :  { %v721_v60 = vpop.f32.mrf.mxu0 }
  0xdd   :  { %v293_v16 = vadd.f32 %v721_v60, %v126_v0  ;;  %v342_v41 = vpack.c.bf16 %v322_v33, %v321_v37  ;;  %v320_v42 = vmax.f32 %v272_v34, 0.0  ;;  %v393_v60 = vpop.permute.xlu1 %392 }
  0xde   :  { %v284_v61 = vpop.f32.mrf.mxu0 }
  0xdf   :  { %v325_v24 = vmax.f32 %v293_v16, 0.0  ;;  %v285_v25 = vadd.f32 %v284_v61, %v116_v6 }
  0xe0   :  { %v722_v63 = vpop.f32.mrf.mxu0 }
  0xe1   :  { %v296_v11 = vadd.f32 %v722_v63, %v131_v62  ;;  %v323_v32 = vmax.f32 %v285_v25, 0.0  ;;  %v388_v62 = vpop.permute.xlu0 %387 }
  0xe2   :  { %v287_v1 = vpop.f32.mrf.mxu0 }
  0xe3   :  { %v326_v21 = vmax.f32 %v296_v11, 0.0  ;;  %v288_v22 = vadd.f32 %v287_v1, %v121_v3  ;;  %v383_v1 = vpop.permute.xlu1 %382 }
  0xe4   :  { %v725_v2 = vpop.f32.mrf.mxu0 }
  0xe5   :  { %v309_v5 = vadd.f32 %v725_v2, %v146_v54  ;;  %v344_v28 = vpack.c.bf16 %v326_v21, %v325_v24  ;;  %v324_v29 = vmax.f32 %v288_v22, 0.0  ;;  %v317_v54 = vmax.f32 %v261_v43, 0.0  ;;  %v378_v3 = vpop.permute.xlu0 %377 }
  0xe6   :  { %v300_v4 = vpop.f32.mrf.mxu0 }
  0xe7   :  { %v301_v8 = vadd.f32 %v300_v4, %v136_v52  ;;  %v329_v12 = vmax.f32 %v309_v5, 0.0  ;;  %v343_v35 = vpack.c.bf16 %v324_v29, %v323_v32  ;;  %v341_v52 = vpack.c.bf16 %v320_v42, %v319_v44  ;;  %v780_v32 = vld [vmem:[%s1035_s5 + $0x8] sm:$0xff]  }
  0xe8   :  { %v726_v7 = vpop.f32.mrf.mxu0  ;;  %v340_v56 = vpack.c.bf16 %v318_v46, %v317_v54 }
  0xe9   :  { %v312_v9 = vadd.f32 %v726_v7, %v151_v59  ;;  %v327_v17 = vmax.f32 %v301_v8, 0.0  ;;  %v779_v59 = vld [vmem:[%s1035_s5] sm:$0xff]   ;;  %v373_v7 = vpop.permute.xlu1 %372  ;;  %v368_v11 = vpop.permute.xlu0 %367 }
  0xea   :  { %v303_v10 = vpop.f32.mrf.mxu0  ;;  %759 = vmatprep.mubr.msk.bf16.mxu0 %vm534_vm1, %v779_v59 }
  0xeb   :  { %v330_v13 = vmax.f32 %v312_v9, 0.0  ;;  %v304_v14 = vadd.f32 %v303_v10, %v141_v57  ;;  %v315_v57 = vmax.f32 %v253_v55, 0.0 }
  0xed   :  { %v328_v18 = vmax.f32 %v304_v14, 0.0  ;;  %v346_v19 = vpack.c.bf16 %v330_v13, %v329_v12  ;;  %v339_v58 = vpack.c.bf16 %v316_v50, %v315_v57  ;;  %v363_v21 = vpop.permute.xlu1 %362  ;;  %v358_v25 = vpop.permute.xlu0 %357 }
  0xef   :  { %v345_v23 = vpack.c.bf16 %v328_v18, %v327_v17  ;;  %727 = vmatprep.subr.bf16.mxu1 %v346_v19 }
  0xf0   :  { %728 = vmatpush3.bf16.msra.mxu1 %v346_v19 }
  0xf1   :  { %729 = vmatprep.subr.bf16.mxu1 %v345_v23  ;;  %v507_v33 = vpop.permute.xlu0 %506  ;;  %v512_v34 = vpop.permute.xlu1 %511 }
  0xf4   :  { %730 = vmatpush3.bf16.msra.mxu1 %v345_v23 }
  0xf5   :  { %731 = vmatprep.subr.bf16.mxu1 %v344_v28  ;;  %v522_v36 = vpop.permute.xlu1 %521 }
  0xf8   :  { %732 = vmatpush3.bf16.msra.mxu1 %v344_v28 }
  0xf9   :  { %733 = vmatprep.subr.bf16.mxu1 %v343_v35  ;;  %v606_v45 = vpop.permute.xlu1 %605 }
  0xfc   :  { %734 = vmatpush3.bf16.msra.mxu1 %v343_v35  ;;  %v517_v35 = vpop.permute.xlu0 %516 }
  0xfd   :  { %735 = vmatprep.subr.bf16.mxu1 %v342_v41 }
 0x100   :  { %736 = vmatpush3.bf16.msra.mxu1 %v342_v41  ;;  %v601_v41 = vpop.permute.xlu0 %600 }
 0x101   :  { %737 = vmatprep.subr.bf16.mxu1 %v341_v52 }
 0x104   :  { %738 = vmatpush3.bf16.msra.mxu1 %v341_v52 }
 0x105   :  { %739 = vmatprep.subr.bf16.mxu1 %v340_v56 }
 0x108   :  { %740 = vmatpush3.bf16.msra.mxu1 %v340_v56  ;;  %v611_v56 = vpop.permute.xlu0 %610 }
 0x109   :  { %741 = vmatprep.subr.bf16.mxu1 %v339_v58 }
 0x10c   :  { %742 = vmatpush3.bf16.msra.mxu1 %v339_v58  ;;  %v616_v58 = vpop.permute.xlu1 %615 }
 0x10f   :  { %744 = vmatmul.mubr.bf16.vlgmr.msra.gmra.mxu1 %v776_v48 }
 0x110   :  { %747 = vmatprep.mubr.bf16.mxu1 %v777_v51 }
 0x117   :  { %748 = vmatmul.mubr.bf16.gmra.mxu1 %v778_v49 }
 0x1cf   :  { %v745_v61 = vpop.f32.mrf.mxu1 }
 0x1d0   :  { %v462_v17 = vadd.f32 %v745_v61, %v368_v11 }
 0x1d1   :  { %v453_v63 = vpop.f32.mrf.mxu1 }
 0x1d2   :  { %v486_v26 = vmax.f32 %v462_v17, 0.0  ;;  %v454_v27 = vadd.f32 %v453_v63, %v358_v25 }
 0x1d3   :  { %v746_v0 = vpop.f32.mrf.mxu1 }
 0x1d4   :  { %v465_v13 = vadd.f32 %v746_v0, %v373_v7  ;;  %v484_v30 = vmax.f32 %v454_v27, 0.0 }
 0x1d5   :  { %v456_v2 = vpop.f32.mrf.mxu1 }
 0x1d6   :  { %v487_v22 = vmax.f32 %v465_v13, 0.0  ;;  %v457_v23 = vadd.f32 %v456_v2, %v363_v21 }
 0x1d7   :  { %v749_v4 = vpop.f32.mrf.mxu1 }
 0x1d8   :  { %v478_v6 = vadd.f32 %v749_v4, %v388_v62  ;;  %v497_v28 = vpack.c.bf16 %v487_v22, %v486_v26  ;;  %v485_v29 = vmax.f32 %v457_v23, 0.0 }
 0x1d9   :  { %v469_v5 = vpop.f32.mrf.mxu1 }
 0x1da   :  { %v470_v9 = vadd.f32 %v469_v5, %v378_v3  ;;  %v490_v14 = vmax.f32 %v478_v6, 0.0  ;;  %v496_v31 = vpack.c.bf16 %v485_v29, %v484_v30  ;;  %v637_v5 = vstv %s1038_s8 }
 0x1db   :  { %v750_v8 = vpop.f32.mrf.mxu1 }
 0x1dc   :  { %v481_v10 = vadd.f32 %v750_v8, %v393_v60  ;;  %v488_v18 = vmax.f32 %v470_v9, 0.0 }
 0x1dd   :  { %v472_v12 = vpop.f32.mrf.mxu1 }
 0x1de   :  { %v491_v15 = vmax.f32 %v481_v10, 0.0  ;;  %v473_v16 = vadd.f32 %v472_v12, %v383_v1 }
 0x1e0   :  { %v499_v19 = vpack.c.bf16 %v491_v15, %v490_v14  ;;  %v489_v20 = vmax.f32 %v473_v16, 0.0 }
 0x1e2   :  { %v498_v24 = vpack.c.bf16 %v489_v20, %v488_v18  ;;  %751 = vmatprep.subr.bf16.mxu0 %v499_v19 }
 0x1e3   :  { %752 = vmatpush3.bf16.msra.mxu0 %v499_v19 }
 0x1e4   :  { %753 = vmatprep.subr.bf16.mxu0 %v498_v24 }
 0x1e7   :  { %754 = vmatpush3.bf16.msra.mxu0 %v498_v24 }
 0x1e8   :  { %755 = vmatprep.subr.bf16.mxu0 %v497_v28 }
 0x1eb   :  { %756 = vmatpush3.bf16.msra.mxu0 %v497_v28 }
 0x1ec   :  { %757 = vmatprep.subr.bf16.mxu0 %v496_v31 }
 0x1ef   :  { %758 = vmatpush3.bf16.msra.mxu0 %v496_v31 }
 0x1f2   :  { %760 = vmatmul.mubr.msk.bf16.vlgmr.msra.gmra.mxu0 %vm534_vm1, %v780_v32 }
 0x2b2   :  { %v761_v37 = vpop.f32.mrf.mxu0 }
 0x2b3   :  { %v584_v39 = vadd.f32 %v761_v37, %v517_v35 }
 0x2b4   :  { %v575_v38 = vpop.f32.mrf.mxu0 }
 0x2b5   :  { %v576_v40 = vadd.f32 %v575_v38, %v507_v33  ;;  %v592_v47 = vmax.f32 %v584_v39, 0.0 }
 0x2b6   :  { %v762_v42 = vpop.f32.mrf.mxu0 }
 0x2b7   :  { %v590_v43 = vmax.f32 %v576_v40, 0.0  ;;  %v587_v44 = vadd.f32 %v762_v42, %v522_v36  ;;  %v620_v50 = vmul.f32 %v611_v56, %v592_v47 }
 0x2b8   :  { %v578_v46 = vpop.f32.mrf.mxu0 }
 0x2b9   :  { %v579_v52 = vadd.f32 %v578_v46, %v512_v34  ;;  %v618_v53 = vmul.f32 %v601_v41, %v590_v43  ;;  %v593_v54 = vmax.f32 %v587_v44, 0.0  ;;  %v626_v60 = vsel %vm622_vm2, %v620_v50, 0.0 }
 0x2bb   :  { %v591_v55 = vmax.f32 %v579_v52, 0.0  ;;  %v623_v48 = vsel %vm622_vm2, %v618_v53, 0.0  ;;  %v621_v51 = vmul.f32 %v616_v58, %v593_v54 }
 0x2bd   :  { %v619_v57 = vmul.f32 %v606_v45, %v591_v55  ;;  %v628_v62 = vsel %vm622_vm2, %v621_v51, 0.0 }
 0x2bf   :  { %v624_v49 = vsel %vm622_vm2, %v619_v57, 0.0 }
 0x2c0   :  { %v625_v59 = vadd.f32 %v624_v49, %v623_v48 }
 0x2c2   :  { %v627_v61 = vadd.f32 %v626_v60, %v625_v59 }
 0x2c4   :  { %v629_v63 = vadd.f32 %v628_v62, %v627_v61 }
 0x2c6   :  { %v630_v0 = vrot.slane %v629_v63, 4 }
 0x2c8   :  { %v631_v1 = vadd.f32 %v630_v0, %v629_v63 }
 0x2ca   :  { %v632_v2 = vrot.slane %v631_v1, 2 }
 0x2cc   :  { %v633_v3 = vadd.f32 %v632_v2, %v631_v1 }
 0x2ce   :  { %v634_v4 = vrot.slane %v633_v3, 1 }
 0x2d0   :  { %v635_v6 = vadd.f32 %v634_v4, %v633_v3 }
 0x2d2   :  { %v638_v7 = vadd.f32 %v637_v5, %v635_v6 }
 0x2d4   :  { %640 = vst.msk [vmem:[#allocation3] sm:$0x1] %vm639_vm3, %v638_v7 }
 0x2d5   :  { %792 = shalt.err (!%p789_p4)
}
 0x2d6   :  { %650 = dma.vmem_to_hbm [thread:$0]  %s648_s15, 16, %s1039_s9, [#allocation4]  }
 0x2d7   :  { %801 = dma.done.wait [#allocation4], 16  }
 0x2d8   :  { %802 = vsyncadd [#allocation4], 4294967280 }
 0x2d9   :  { %654 = vsyncpa [#allocation4], 1 }

</bundles_post_ra>
